<compile_context>
chip_gen: v7x
topology: tpu7x:2x2x1
jax: 0.10.0
libtpu: 0.0.40
codegen_flags: <defaults>
</compile_context>

<pallas_src>
import functools

import jax
import jax.numpy as jnp
from jax.experimental import pallas as pl
from jax.experimental.pallas import tpu as pltpu


def _numerical_transformer_kernel(
    x_ref,        # (TB, F)      input numerical features (batch tile)
    we_ref,       # (F, F*D)     block-diagonal expanded tokenizer weight
    bflat_ref,    # (1, F*D)     tokenizer bias, flattened lane-dense
    wlast_ref,    # (1, D)       tokenizer weight row of the last feature
    blast_ref,    # (1, D)       tokenizer bias row of the last feature
    gamma_ref,    # (1, D)       head LayerNorm scale
    beta_ref,     # (1, D)       head LayerNorm shift
    hw_ref,       # (D, C)       head linear weight
    hb_ref,       # (1, C)       head linear bias
    feat_ref,     # (TB, F*D)    output: token embeddings (lane-dense, flattened)
    logits_ref,   # (TB, C)      output: logits
):
    x = x_ref[...]                                          # (TB, F)

    # NumericalFeatureTokenizer as one MXU matmul (MXU is otherwise idle):
    #   feat[b, f*D + d] = x[b, f] * weight[f, d] + bias[f, d]
    feat = jnp.dot(x, we_ref[...], preferred_element_type=jnp.float32)
    feat = feat + bflat_ref[...]
    feat_ref[...] = feat.astype(feat_ref.dtype)             # full-width vst (F*D = 256)

    # cls_token = Identity, FT_Transformer with n_blocks=0 = pass-through.

    # FT_Transformer.Head: last token -> LayerNorm -> ReLU -> Linear.
    # Recompute the last token from x (avoids slicing 32 lanes out of the
    # 256-wide MXU result; keeps the head independent of the feature store).
    last = x[:, -1:] * wlast_ref[...] + blast_ref[...]       # (TB, D)
    mean = jnp.mean(last, axis=-1, keepdims=True)
    centered = last - mean
    var = jnp.mean(centered * centered, axis=-1, keepdims=True)
    ln = centered * jax.lax.rsqrt(var + 1e-5)
    ln = ln * gamma_ref[...] + beta_ref[...]
    act = jnp.maximum(ln, 0.0)                               # ReLU (head_activation='relu')
    logits = jnp.dot(act, hw_ref[...], preferred_element_type=jnp.float32)
    logits_ref[...] = logits + hb_ref[...]


def _round_up(n, m):
    return ((n + m - 1) // m) * m


def _pick_batch_tile(B, block_b):
    """Multiple-of-8 batch tile; prefers a tile that divides the batch exactly."""
    B8 = _round_up(B, 8)
    tb_max = max(8, _round_up(block_b, 8))
    if B8 >= 16:
        # Keep at least two grid steps so the "parallel" batch axis can be
        # sharded across v7x's two TensorCores.
        tb_max = min(tb_max, _round_up(pl.cdiv(B8, 2), 8))
    if B8 <= tb_max:
        return B8
    # Prefer a tile that exactly divides the (8-rounded) batch: no padded tail
    # block and no post-kernel slice copy of the dominant feature tensor.
    lo = max(8, tb_max // 2)
    for tb in range(tb_max, lo - 1, -8):
        if B8 % tb == 0:
            return tb
    return tb_max


def _vmem_limit_bytes(TB, F, D, C, feat_itemsize):
    """Size the scoped-VMEM request from the actual double-buffered working set."""
    fd = F * D
    def tile(rows, cols, itemsize):
        return _round_up(max(rows, 1), 8) * _round_up(max(cols, 1), 128) * itemsize
    working = 2 * (                      # everything is double-buffered by BlockSpec
        tile(TB, F, 4)                   # x
        + tile(TB, fd, feat_itemsize)    # features output
        + tile(TB, C, 4)                 # logits output
        + tile(F, fd, 4)                 # W_expand
        + tile(1, fd, 4)                 # bias_flat
        + 4 * tile(1, D, 4)              # w_last, b_last, gamma, beta
        + tile(D, C, 4) + tile(1, C, 4)  # head weight / bias
    )
    limit = working * 3 // 2 + (2 << 20)          # 1.5x headroom + 2 MiB slack
    return int(min(max(limit, 8 << 20), 100 << 20))


@functools.partial(jax.jit, static_argnames=("block_b", "features_dtype"))
def numerical_transformer_forward(x, weight, bias, gamma, beta, head_w, head_b,
                                  *, block_b=4096, features_dtype=jnp.float32):
    B, F = x.shape
    D = weight.shape[1]
    C = head_w.shape[1]
    FD = F * D

    TB = _pick_batch_tile(B, block_b)
    num_blocks = pl.cdiv(B, TB)
    B_pad = num_blocks * TB
    if B_pad != B:
        x = jnp.pad(x, ((0, B_pad - B), (0, 0)))  # fallback: zero-pad tail rows

    # Block-diagonal expansion of the tokenizer weight so the tokenizer is a
    # single MXU matmul:  W_expand[f, g*D + d] = weight[f, d] if f == g else 0.
    eye = jnp.eye(F, dtype=weight.dtype)
    w_expand = (eye[:, :, None] * weight[None, :, :]).reshape(F, FD)
    bias_flat = bias.reshape(1, FD)
    w_last = weight[F - 1:F, :]
    b_last = bias[F - 1:F, :]

    feat_itemsize = jnp.dtype(features_dtype).itemsize

    feat_flat, logits = pl.pallas_call(
        _numerical_transformer_kernel,
        grid=(num_blocks,),
        in_specs=[
            pl.BlockSpec((TB, F), lambda i: (i, 0)),     # x (batch-tiled)
            pl.BlockSpec((F, FD), lambda i: (0, 0)),     # W_expand (resident)
            pl.BlockSpec((1, FD), lambda i: (0, 0)),     # bias_flat (resident)
            pl.BlockSpec((1, D), lambda i: (0, 0)),      # w_last
            pl.BlockSpec((1, D), lambda i: (0, 0)),      # b_last
            pl.BlockSpec((1, D), lambda i: (0, 0)),      # LN gamma
            pl.BlockSpec((1, D), lambda i: (0, 0)),      # LN beta
            pl.BlockSpec((D, C), lambda i: (0, 0)),      # head weight
            pl.BlockSpec((1, C), lambda i: (0, 0)),      # head bias
        ],
        out_specs=(
            pl.BlockSpec((TB, FD), lambda i: (i, 0)),    # features (lane-dense)
            pl.BlockSpec((TB, C), lambda i: (i, 0)),     # logits (tiny, masked vst is fine)
        ),
        out_shape=(
            jax.ShapeDtypeStruct((B_pad, FD), features_dtype),
            jax.ShapeDtypeStruct((B_pad, C), jnp.float32),
        ),
        compiler_params=pltpu.CompilerParams(
            dimension_semantics=("parallel",),           # megacore-shard the batch axis
            vmem_limit_bytes=_vmem_limit_bytes(TB, F, D, C, feat_itemsize),
        ),
    )(x, w_expand, bias_flat, w_last, b_last, gamma, beta, head_w, head_b)

    # (B_pad, F*D) -> (B_pad, F, D): row-major reshape, free when no slice follows.
    feat = feat_flat.reshape(B_pad, F, D)
    if B_pad != B:
        # Only hit when no multiple-of-8 tile divides the batch.
        feat = feat[:B]
        logits = logits[:B]
    return {"logits": logits, "features": feat}


def _reference_forward(x, weight, bias, gamma, beta, head_w, head_b):
    feat = weight[None] * x[..., None] + bias[None]
    last = feat[:, -1, :]
    mean = last.mean(axis=-1, keepdims=True)
    var = ((last - mean) ** 2).mean(axis=-1, keepdims=True)
    ln = (last - mean) / jnp.sqrt(var + 1e-5) * gamma + beta
    act = jnp.maximum(ln, 0.0)
    logits = act @ head_w + head_b
    return feat, logits


if __name__ == "__main__":
    # Small, module-consistent shapes. block_b=16 with B=40 exercises a 5-step
    # grid where the chosen tile (8 rows) divides the batch exactly (no padded
    # tail block, no post-kernel slice copy).
    B = 40           # batch
    in_features = 8  # number of continuous features
    d_token = 32     # token size
    num_classes = 4  # head output dim (default 0 is degenerate; pick a small positive value)

    key = jax.random.PRNGKey(0)
    k_x, k_w, k_b, k_hw, k_hb = jax.random.split(key, 5)

    x = jax.random.normal(k_x, (B, in_features), dtype=jnp.float32)

    # Tokenizer params: 'normal' initialization with std = 1/sqrt(d_token).
    std = 1.0 / jnp.sqrt(jnp.float32(d_token))
    weight = jax.random.normal(k_w, (in_features, d_token), dtype=jnp.float32) * std
    bias = jax.random.normal(k_b, (in_features, d_token), dtype=jnp.float32) * std

    # Head LayerNorm params.
    gamma = jnp.ones((1, d_token), dtype=jnp.float32)
    beta = jnp.zeros((1, d_token), dtype=jnp.float32)

    # Head linear params (nn.Linear default-ish uniform init).
    lim = 1.0 / jnp.sqrt(jnp.float32(d_token))
    head_w = jax.random.uniform(
        k_hw, (d_token, num_classes), minval=-lim, maxval=lim, dtype=jnp.float32
    )
    head_b = jax.random.uniform(
        k_hb, (1, num_classes), minval=-lim, maxval=lim, dtype=jnp.float32
    )

    out = numerical_transformer_forward(
        x, weight, bias, gamma, beta, head_w, head_b, block_b=16
    )
    jax.block_until_ready(out)

    ref_feat, ref_logits = _reference_forward(x, weight, bias, gamma, beta, head_w, head_b)
    assert out["features"].shape == (B, in_features, d_token)
    assert out["logits"].shape == (B, num_classes)
    assert jnp.allclose(out["features"], ref_feat, atol=1e-5, rtol=1e-5)
    assert jnp.allclose(out["logits"], ref_logits, atol=1e-4, rtol=1e-4)

    print("KERNEL_OK")
</pallas_src>

<mosaic_0001>
module attributes {stable_mosaic.version = 11 : i64} {
  func.func @_numerical_transformer_kernel(%arg0: i32, %arg1: memref<8x8xf32, #tpu.memory_space<vmem>>, %arg2: memref<8x256xf32, #tpu.memory_space<vmem>>, %arg3: memref<1x256xf32, #tpu.memory_space<vmem>>, %arg4: memref<1x32xf32, #tpu.memory_space<vmem>>, %arg5: memref<1x32xf32, #tpu.memory_space<vmem>>, %arg6: memref<1x32xf32, #tpu.memory_space<vmem>>, %arg7: memref<1x32xf32, #tpu.memory_space<vmem>>, %arg8: memref<32x4xf32, #tpu.memory_space<vmem>>, %arg9: memref<1x4xf32, #tpu.memory_space<vmem>>, %arg10: memref<8x256xf32, #tpu.memory_space<vmem>>, %arg11: memref<8x4xf32, #tpu.memory_space<vmem>>) attributes {dimension_semantics = [#tpu.dimension_semantics<parallel>], iteration_bounds = array<i64: 5>, scalar_prefetch = 0 : i64, scratch_operands = 0 : i64, tpu.core_type = #tpu.core_type<tc>, window_params = [{transform_indices = @transform_0, window_bounds = array<i64: 8, 8>}, {pipeline_mode = #tpu.pipeline_mode<synchronous>, transform_indices = @transform_1, window_bounds = array<i64: 8, 256>}, {pipeline_mode = #tpu.pipeline_mode<synchronous>, transform_indices = @transform_2, window_bounds = array<i64: 1, 256>}, {pipeline_mode = #tpu.pipeline_mode<synchronous>, transform_indices = @transform_3, window_bounds = array<i64: 1, 32>}, {pipeline_mode = #tpu.pipeline_mode<synchronous>, transform_indices = @transform_4, window_bounds = array<i64: 1, 32>}, {pipeline_mode = #tpu.pipeline_mode<synchronous>, transform_indices = @transform_5, window_bounds = array<i64: 1, 32>}, {pipeline_mode = #tpu.pipeline_mode<synchronous>, transform_indices = @transform_6, window_bounds = array<i64: 1, 32>}, {pipeline_mode = #tpu.pipeline_mode<synchronous>, transform_indices = @transform_7, window_bounds = array<i64: 32, 4>}, {pipeline_mode = #tpu.pipeline_mode<synchronous>, transform_indices = @transform_8, window_bounds = array<i64: 1, 4>}, {transform_indices = @transform_9, window_bounds = array<i64: 8, 256>}, {transform_indices = @transform_10, window_bounds = array<i64: 8, 4>}]} {
    %c0 = arith.constant 0 : index
    %c0_0 = arith.constant 0 : index
    %0 = vector.load %arg1[%c0, %c0_0] : memref<8x8xf32, #tpu.memory_space<vmem>>, vector<8x8xf32>
    %c0_1 = arith.constant 0 : index
    %c0_2 = arith.constant 0 : index
    %1 = vector.load %arg2[%c0_1, %c0_2] : memref<8x256xf32, #tpu.memory_space<vmem>>, vector<8x256xf32>
    %cst = arith.constant dense<0.000000e+00> : vector<8x256xf32>
    %2 = tpu.matmul %0, %1, %cst {dimension_numbers = #tpu.dot_dimension_numbers<[1], [0], [0], [1], [0, 0, 1, 1], [], []>} : vector<8x8xf32>, vector<8x256xf32>, vector<8x256xf32> -> vector<8x256xf32>
    %c0_3 = arith.constant 0 : index
    %c0_4 = arith.constant 0 : index
    %3 = vector.load %arg3[%c0_3, %c0_4] : memref<1x256xf32, #tpu.memory_space<vmem>>, vector<1x256xf32>
    %4 = vector.broadcast %3 : vector<1x256xf32> to vector<8x256xf32>
    %5 = arith.addf %2, %4 : vector<8x256xf32>
    %c0_5 = arith.constant 0 : index
    %c0_6 = arith.constant 0 : index
    %6 = vector.load %arg10[%c0_5, %c0_6] : memref<8x256xf32, #tpu.memory_space<vmem>>, vector<8x256xf32>
    tpu.vector_store %arg10[%c0_5, %c0_6], %5 {strides = array<i32>} : memref<8x256xf32, #tpu.memory_space<vmem>>, vector<8x256xf32>,
    %7 = vector.extract_strided_slice %0 {offsets = [0, 7], sizes = [8, 1], strides = [1, 1]} : vector<8x8xf32> to vector<8x1xf32>
    %c0_7 = arith.constant 0 : index
    %c0_8 = arith.constant 0 : index
    %8 = vector.load %arg4[%c0_7, %c0_8] : memref<1x32xf32, #tpu.memory_space<vmem>>, vector<1x32xf32>
    %9 = vector.broadcast %7 : vector<8x1xf32> to vector<8x32xf32>
    %10 = vector.broadcast %8 : vector<1x32xf32> to vector<8x32xf32>
    %11 = arith.mulf %9, %10 : vector<8x32xf32>
    %c0_9 = arith.constant 0 : index
    %c0_10 = arith.constant 0 : index
    %12 = vector.load %arg5[%c0_9, %c0_10] : memref<1x32xf32, #tpu.memory_space<vmem>>, vector<1x32xf32>
    %13 = vector.broadcast %12 : vector<1x32xf32> to vector<8x32xf32>
    %14 = arith.addf %11, %13 : vector<8x32xf32>
    %cst_11 = arith.constant dense<0.000000e+00> : vector<8xf32>
    %15 = vector.multi_reduction <add>, %14, %cst_11 [1] : vector<8x32xf32> to vector<8xf32>
    %16 = vector.shape_cast %15 : vector<8xf32> to vector<8x1xf32>
    %cst_12 = arith.constant 3.200000e+01 : f32
    %17 = vector.broadcast %cst_12 : f32 to vector<8x1xf32>
    %18 = arith.divf %16, %17 : vector<8x1xf32>
    %19 = vector.broadcast %18 : vector<8x1xf32> to vector<8x32xf32>
    %20 = arith.subf %14, %19 : vector<8x32xf32>
    %21 = arith.mulf %20, %20 : vector<8x32xf32>
    %cst_13 = arith.constant dense<0.000000e+00> : vector<8xf32>
    %22 = vector.multi_reduction <add>, %21, %cst_13 [1] : vector<8x32xf32> to vector<8xf32>
    %23 = vector.shape_cast %22 : vector<8xf32> to vector<8x1xf32>
    %cst_14 = arith.constant 3.200000e+01 : f32
    %24 = vector.broadcast %cst_14 : f32 to vector<8x1xf32>
    %25 = arith.divf %23, %24 : vector<8x1xf32>
    %cst_15 = arith.constant 9.99999974E-6 : f32
    %26 = vector.broadcast %cst_15 : f32 to vector<8x1xf32>
    %27 = arith.addf %25, %26 : vector<8x1xf32>
    %28 = math.rsqrt %27 : vector<8x1xf32>
    %29 = vector.broadcast %28 : vector<8x1xf32> to vector<8x32xf32>
    %30 = arith.mulf %20, %29 : vector<8x32xf32>
    %c0_16 = arith.constant 0 : index
    %c0_17 = arith.constant 0 : index
    %31 = vector.load %arg6[%c0_16, %c0_17] : memref<1x32xf32, #tpu.memory_space<vmem>>, vector<1x32xf32>
    %32 = vector.broadcast %31 : vector<1x32xf32> to vector<8x32xf32>
    %33 = arith.mulf %30, %32 : vector<8x32xf32>
    %c0_18 = arith.constant 0 : index
    %c0_19 = arith.constant 0 : index
    %34 = vector.load %arg7[%c0_18, %c0_19] : memref<1x32xf32, #tpu.memory_space<vmem>>, vector<1x32xf32>
    %35 = vector.broadcast %34 : vector<1x32xf32> to vector<8x32xf32>
    %36 = arith.addf %33, %35 : vector<8x32xf32>
    %cst_20 = arith.constant 0.000000e+00 : f32
    %37 = vector.broadcast %cst_20 : f32 to vector<8x32xf32>
    %38 = arith.maximumf %36, %37 : vector<8x32xf32>
    %c0_21 = arith.constant 0 : index
    %c0_22 = arith.constant 0 : index
    %39 = vector.load %arg8[%c0_21, %c0_22] : memref<32x4xf32, #tpu.memory_space<vmem>>, vector<32x4xf32>
    %cst_23 = arith.constant dense<0.000000e+00> : vector<8x4xf32>
    %40 = tpu.matmul %38, %39, %cst_23 {dimension_numbers = #tpu.dot_dimension_numbers<[1], [0], [0], [1], [0, 0, 1, 1], [], []>} : vector<8x32xf32>, vector<32x4xf32>, vector<8x4xf32> -> vector<8x4xf32>
    %c0_24 = arith.constant 0 : index
    %c0_25 = arith.constant 0 : index
    %41 = vector.load %arg9[%c0_24, %c0_25] : memref<1x4xf32, #tpu.memory_space<vmem>>, vector<1x4xf32>
    %42 = vector.broadcast %41 : vector<1x4xf32> to vector<8x4xf32>
    %43 = arith.addf %40, %42 : vector<8x4xf32>
    %c0_26 = arith.constant 0 : index
    %c0_27 = arith.constant 0 : index
    %44 = vector.load %arg11[%c0_26, %c0_27] : memref<8x4xf32, #tpu.memory_space<vmem>>, vector<8x4xf32>
    tpu.vector_store %arg11[%c0_26, %c0_27], %43 {strides = array<i32>} : memref<8x4xf32, #tpu.memory_space<vmem>>, vector<8x4xf32>,
    return
  }
  func.func @transform_0(%arg0: i32) -> (i32, i32) {
    %c0_i32 = arith.constant 0 : i32
    %c0_i32_0 = arith.constant 0 : i32
    return %arg0, %c0_i32 : i32, i32
  }
  func.func @transform_1(%arg0: i32) -> (i32, i32) {
    %c0_i32 = arith.constant 0 : i32
    %c0_i32_0 = arith.constant 0 : i32
    %c0_i32_1 = arith.constant 0 : i32
    return %c0_i32, %c0_i32_0 : i32, i32
  }
  func.func @transform_2(%arg0: i32) -> (i32, i32) {
    %c0_i32 = arith.constant 0 : i32
    %c0_i32_0 = arith.constant 0 : i32
    %c0_i32_1 = arith.constant 0 : i32
    return %c0_i32, %c0_i32_0 : i32, i32
  }
  func.func @transform_3(%arg0: i32) -> (i32, i32) {
    %c0_i32 = arith.constant 0 : i32
    %c0_i32_0 = arith.constant 0 : i32
    %c0_i32_1 = arith.constant 0 : i32
    return %c0_i32, %c0_i32_0 : i32, i32
  }
  func.func @transform_4(%arg0: i32) -> (i32, i32) {
    %c0_i32 = arith.constant 0 : i32
    %c0_i32_0 = arith.constant 0 : i32
    %c0_i32_1 = arith.constant 0 : i32
    return %c0_i32, %c0_i32_0 : i32, i32
  }
  func.func @transform_5(%arg0: i32) -> (i32, i32) {
    %c0_i32 = arith.constant 0 : i32
    %c0_i32_0 = arith.constant 0 : i32
    %c0_i32_1 = arith.constant 0 : i32
    return %c0_i32, %c0_i32_0 : i32, i32
  }
  func.func @transform_6(%arg0: i32) -> (i32, i32) {
    %c0_i32 = arith.constant 0 : i32
    %c0_i32_0 = arith.constant 0 : i32
    %c0_i32_1 = arith.constant 0 : i32
    return %c0_i32, %c0_i32_0 : i32, i32
  }
  func.func @transform_7(%arg0: i32) -> (i32, i32) {
    %c0_i32 = arith.constant 0 : i32
    %c0_i32_0 = arith.constant 0 : i32
    %c0_i32_1 = arith.constant 0 : i32
    return %c0_i32, %c0_i32_0 : i32, i32
  }
  func.func @transform_8(%arg0: i32) -> (i32, i32) {
    %c0_i32 = arith.constant 0 : i32
    %c0_i32_0 = arith.constant 0 : i32
    %c0_i32_1 = arith.constant 0 : i32
    return %c0_i32, %c0_i32_0 : i32, i32
  }
  func.func @transform_9(%arg0: i32) -> (i32, i32) {
    %c0_i32 = arith.constant 0 : i32
    %c0_i32_0 = arith.constant 0 : i32
    return %arg0, %c0_i32 : i32, i32
  }
  func.func @transform_10(%arg0: i32) -> (i32, i32) {
    %c0_i32 = arith.constant 0 : i32
    %c0_i32_0 = arith.constant 0 : i32
    return %arg0, %c0_i32 : i32, i32
  }
}

</mosaic_0001>

<bundles_post_ra>
// kernel: numerical_transformer_forward.1
= control target key start
LH: loop header
LB: loop body
LE: loop exit
PB: predicated region body
PF: predicated region fallthrough
CT: control target
= control target key end

     0   :  { %s807_s13 = smov 0   ;;  %s874_s0 = inlined_call_operand.vmem [shape: f32[40,8], index: 0, kind: input, shape index: {}]   ;;  %s875_s1 = inlined_call_operand.vmem [shape: f32[8,256], index: 1, kind: input, shape index: {}]   ;;  %s876_s2 = inlined_call_operand.vmem [shape: f32[1,256], index: 2, kind: input, shape index: {}]   ;;  %s877_s3 = inlined_call_operand.vmem [shape: f32[1,32], index: 3, kind: input, shape index: {}]   ;;  %s878_s4 = inlined_call_operand.vmem [shape: f32[1,32], index: 4, kind: input, shape index: {}]   ;;  %s879_s5 = inlined_call_operand.vmem [shape: f32[1,32], index: 5, kind: input, shape index: {}]   ;;  %s880_s6 = inlined_call_operand.vmem [shape: f32[1,32], index: 6, kind: input, shape index: {}]   ;;  %s881_s7 = inlined_call_operand.vmem [shape: f32[32,4], index: 7, kind: input, shape index: {}]   ;;  %s882_s8 = inlined_call_operand.vmem [shape: f32[1,4], index: 8, kind: input, shape index: {}]   ;;  %s883_s9 = inlined_call_operand.vmem [shape: f32[40,256], index: 9, kind: output, shape index: {0}]   ;;  %s884_s10 = inlined_call_operand.vmem [shape: f32[40,4], index: 10, kind: output, shape index: {1}]  }
   0x1 LB: > { %s684_s14 = sadd.s32 4294967295, %s746_s13   ;;  %p688_p0 = scmp.ge.s32.totalorder %s746_s13, 1  ;;  %s746_s13 = sphi %s807_s13, %s21_s13  }
   0x2   : > { %p314_p1 = scmp.lt.s32.totalorder %s746_s13, 6 }
   0x4   : > { %p315_p2 = pnand %p688_p0, %p314_p1 }
   0x5   : > { %p355_p3 = scmp.lt.s32.totalorder (!%p315_p2), %s684_s14, 4  ;;  %v748_v0 = vmov (!%p315_p2), 7   ;;  %v694_v2 = vld [vmem:[%s877_s3] ss:$0 sm:$0xff] (!%p315_p2)  ;;  %vm480_vm0 = vcmask (!%p315_p2), 261120   ;;  %v513_v14 = vld [vmem:[%s881_s7 + $0x8] sm:$0xff] (!%p315_p2)  ;;  %v373_v33 = vlaneseq (!%p315_p2) }
   0x6   : > { %318 = sbr.rel (%p315_p2) target bundleno = 679 (0x2a7), region = 56  ;;  %737 = vset.pattern.permute.xlu0 (!%p315_p2), %v748_v0  ;;  %v695_v4 = vld [vmem:[%s878_s4] ss:$0 sm:$0xff] (!%p315_p2)  ;;  %v749_v16 = vmov (!%p315_p2), 0.0|0.0   ;;  %v370_v17 = vld [vmem:[%s875_s1 + $0x8] sm:$0xff] (!%p315_p2)  ;;  %v514_v19 = vld [vmem:[%s881_s7 + $0x10] sm:$0xff] (!%p315_p2) }
   0x7   : > { %v512_v13 = vld [vmem:[%s881_s7] sm:$0xff] (!%p315_p2)  ;;  %719 = vmatprep.subr.bf16.mxu1 (!%p315_p2), %v749_v16  ;;  %387 = vmatprep.subr.mxu0 (!%p315_p2), %v370_v17  ;;  %v515_v20 = vld [vmem:[%s881_s7 + $0x18] sm:$0xff] (!%p315_p2)  ;;  %vm383_vm1 = vcmask (!%p315_p2), 64512   ;;  %v750_v22 = vmov (!%p315_p2), 0.0   ;;  %vm751_vm2 = vmmov (!%p315_p2), 0   ;;  %v374_v34 = vshrl.u32 (!%p315_p2), %v373_v33, 7 }
   0x8   : > { %v720_v15 = vpack.c.bf16 (!%p315_p2), %v513_v14, %v512_v13  ;;  %v369_v18 = vld [vmem:[%s875_s1] sm:$0xff] (!%p315_p2)  ;;  %v723_v21 = vpack.c.bf16 (!%p315_p2), %v515_v20, %v514_v19  ;;  %451 = vmatprep.mubr.f32.mxu0 (!%p315_p2), %v750_v22  ;;  %716 = vmatprep.mubr.msk.f32.mxu1 (!%p315_p2), %vm751_vm2, %v750_v22  ;;  %vm596_vm3 = vcmask (!%p315_p2), 31744  }
   0x9   : > { %388 = vmatpush1.msra.mxu0 (!%p315_p2), %v369_v18  ;;  %v696_v27 = vld [vmem:[%s879_s5] ss:$0 sm:$0xff] (!%p315_p2)  ;;  %v375_v35 = vsub.s32 (!%p315_p2), 0, %v374_v34  ;;  %v379_v37 = vsub.s32 (!%p315_p2), 1, %v374_v34 }
   0xa   : > { %721 = vmatpush3.bf16.msra.mxu1 (!%p315_p2), %v720_v15  ;;  %v697_v29 = vld [vmem:[%s880_s6] ss:$0 sm:$0xff] (!%p315_p2) }
   0xb   : > { %722 = vmatprep.subr.bf16.mxu1 (!%p315_p2), %v749_v16  ;;  %v371_v36 = vld [vmem:[%s876_s2] sm:$0x3] (!%p315_p2) }
   0xc   : > { %v376_v38 = vrot.slane (!%p315_p2), %v371_v36, %v375_v35  ;;  %v380_v39 = vrot.slane (!%p315_p2), %v371_v36, %v379_v37  ;;  %v698_v44 = vld [vmem:[%s882_s8] ss:$0 sm:$0xff] (!%p315_p2) }
   0xd   : > { %s886_s14 = smov (!%p355_p3, %s684_s14), 4 }
   0xe   : > { %s689_s15 = sshll.u32 %s886_s14, 3  ;;  %724 = vmatpush3.bf16.msra.mxu1 %v723_v21  ;;  %s702_s24 = sshll.u32 %s886_s14, 4 }
   0xf   : > { %s358_s18 = scalar_lea.vmem %s874_s0, %s689_s15  ;;  %s363_s27 = scalar_lea.vmem %s883_s9, %s702_s24 }
  0x10   : > { %v368_v1 = vld [vmem:[%s358_s18] sm:$0xff]  ;;  %s367_s12 = scalar_lea.vmem %s884_s10, %s689_s15 }
  0x11   : > { %462 = vperm.xlu0 %737, %v368_v1   ;;  %693 = vmatmul.mubr.msk.f32.vlgmr.msra.gmra.mrb[0].mxu0 %vm383_vm1, %v368_v1 }
  0x90   : > { %v463_v3 = vpop.permute.xlu0 %462 }
  0x91   : > { %v471_v5 = vmul.f32 %v694_v2, %v463_v3 }
  0x93   : > { %v479_v6 = vadd.f32 %v695_v4, %v471_v5 }
  0x95   : > { %v481_v7 = vsel %vm480_vm0, %v479_v6, 0.0 }
  0x96   : > { %482 = vadd.xlane.f32.xlu0 %v481_v7 }
  0xe4   : > { %v453_v40 = vpop.f32.mrb[0].mxu0 }
  0xe5   : > { %v454_v41 = vadd.f32 %v453_v40, %v376_v38  ;;  %v455_v42 = vpop.f32.mrb[1].mxu0 }
  0xe6   : > { %v456_v43 = vadd.f32 %v455_v42, %v380_v39 }
  0xe7   : > { %458 = vst [vmem:[%s363_s27] sm:$0xff] %v454_v41 }
  0xe8   : > { %459 = vst [vmem:[%s363_s27 + $0x8] sm:$0xff] %v456_v43 }
 0x123   : > { %v483_v8 = vpop.xlane.xlu0 %482 }
 0x124   : > { %v485_v9 = vmul.f32 0.03125, %v483_v8 }
 0x126   : > { %v486_v10 = vsub.f32 %v479_v6, %v485_v9 }
 0x128   : > { %v487_v11 = vmul.f32 %v486_v10, %v486_v10 }
 0x12a   : > { %v488_v12 = vsel %vm480_vm0, %v487_v11, 0.0 }
 0x12b   : > { %489 = vadd.xlane.f32.xlu1 %v488_v12 }
 0x1b8   : > { %v490_v23 = vpop.xlane.xlu1 %489 }
 0x1b9   : > { %v491_v24 = vmul.f32 0.03125, %v490_v23 }
 0x1bb   : > { %v492_v25 = vadd.f32 1e-05, %v491_v24 }
 0x1bd   : > { %738 = vrsqrt.f32 %v492_v25 }
 0x1c7   : > { %v739_v26 = vpop.eup %738 }
 0x1c8   : > { %v494_v28 = vmul.f32 %v739_v26, %v486_v10 }
 0x1ca   : > { %v502_v30 = vmul.f32 %v696_v27, %v494_v28 }
 0x1cc   : > { %v510_v31 = vadd.f32 %v697_v29, %v502_v30 }
 0x1ce   : > { %v511_v32 = vmax.f32 %v510_v31, 0.0 }
 0x1d0   : > { %717 = vmatmul.mubr.msk.f32.vlgmr.msra.gmra.mrb[0].mxu1 %vm480_vm0, %v511_v32 }
 0x2a3   : > { %v592_v45 = vpop.f32.mrb[0].mxu1 }
 0x2a4   : > { %v593_v46 = vadd.f32 %v698_v44, %v592_v45  ;;  %v718_v47 = vpop.f32.mrb[1].mxu1 }
 0x2a6   : > { %597 = vst.msk [vmem:[%s367_s12] sm:$0xff] %vm596_vm3, %v593_v46 }
 0x2a7 PF: > { %s21_s13 = sadd.s32 1, %s746_s13  }
 0x2a8   : > { %p18_p4 = scmp.ge.s32.totalorder %s21_s13, 7  }
 0x2aa   :  { %20 = sbr.rel (!%p18_p4) target bundleno = 1 (0x1), region = 98 }

</bundles_post_ra>
